<compile_context>
chip_gen: v7x
topology: tpu7x:2x2x1
jax: 0.10.0
libtpu: 0.0.40
codegen_flags: <defaults>
</compile_context>

<pallas_src>
import functools

import jax
import jax.numpy as jnp
from jax.experimental import pallas as pl
from jax.experimental.pallas import tpu as pltpu

LANE = 128       # TPU lane width
HIDDEN = 128     # DQN hidden width (already lane-aligned)
_FMA_K_MAX = 32  # below this, layer 1 runs as VPU broadcast-FMAs instead of an MXU dot


def _round_up(n, m):
    return ((n + m - 1) // m) * m


def dqn_kernel(x_ref, w1_ref, b1_ref, w2_ref, b2_ref, w3_ref, b3_ref, o_ref,
               *, n_obs, compute_dtype):
    """One batch tile: x [tb, n_obs] f32 -> Q [tb, n3] f32 (n3 = lane-padded action width)."""
    # ---- layer 1 + ReLU -------------------------------------------------------------
    if n_obs <= _FMA_K_MAX:
        # Tiny contraction (e.g. n_obs = 4): n_obs broadcast-FMAs on the VPU in f32.
        # Avoids feeding the MXU a mostly-padded K and keeps layer 1 at full precision.
        h1 = x_ref[:, 0:1] * w1_ref[0:1, :]
        for j in range(1, n_obs):
            h1 = h1 + x_ref[:, j:j + 1] * w1_ref[j:j + 1, :]
    else:
        # Larger observation dims: plain MXU dot over the unpadded K = n_obs.
        h1 = jnp.dot(x_ref[...], w1_ref[...], preferred_element_type=jnp.float32)
    h1 = jnp.maximum(h1 + b1_ref[...], 0.0)

    # ---- layer 2 + ReLU (MXU; operands pre-cast to compute_dtype, f32 accumulation) ---
    h2 = jnp.dot(h1.astype(compute_dtype), w2_ref[...],
                 preferred_element_type=jnp.float32) + b2_ref[...]
    h2 = jnp.maximum(h2, 0.0)

    # ---- layer 3 (lane-dense 128-wide output; padded action lanes are exactly 0) ------
    o_ref[...] = jnp.dot(h2.astype(compute_dtype), w3_ref[...],
                         preferred_element_type=jnp.float32) + b3_ref[...]


def prepare_params(params, compute_dtype=jnp.bfloat16):
    """One-time layout / dtype prep (call once, NOT per forward step).

    params: w1 [n_obs,128], b1, w2 [128,128], b2, w3 [128,n_actions], b3 (all f32).
    Returns weights with w3/b3 zero-padded to a lane-dense 128-wide action axis,
    w2/w3 cast to `compute_dtype` (bf16 MXU fast path by default); w1 and all biases
    stay f32 (layer 1, bias adds and ReLU run in f32).
    """
    n_actions = params["w3"].shape[1]
    n3 = _round_up(max(n_actions, 1), LANE)
    w3 = jnp.pad(params["w3"].astype(jnp.float32), ((0, 0), (0, n3 - n_actions)))
    b3 = jnp.pad(params["b3"].reshape(1, -1).astype(jnp.float32),
                 ((0, 0), (0, n3 - n_actions)))
    return dict(
        w1=params["w1"].astype(jnp.float32),
        b1=params["b1"].reshape(1, HIDDEN).astype(jnp.float32),
        w2=params["w2"].astype(compute_dtype),
        b2=params["b2"].reshape(1, HIDDEN).astype(jnp.float32),
        w3=w3.astype(compute_dtype),
        b3=b3,
    )


@functools.partial(jax.jit, static_argnames=("n_actions", "block_b"))
def dqn_forward(x, prepped, *, n_actions=None, block_b=1024):
    """x: [B, n_obs] f32; prepped: output of prepare_params.

    Returns [B, n_actions] Q-values (module semantics).  With n_actions=None the raw
    lane-padded [B, 128] slab is returned; prefer that form when fusing a downstream
    consumer (e.g. argmax action selection) to skip the extra HBM read of unused lanes.
    """
    B, n_obs = x.shape
    n3 = prepped["w3"].shape[1]
    compute_dtype = prepped["w2"].dtype

    # Batch tiling: fat tiles amortize the ~0.35us/step pipeline overhead; if one tile
    # would cover the whole batch, split it so v7x can shard >= 2 tiles across its 2 TCs.
    tb = min(block_b, _round_up(B, 8))
    if pl.cdiv(B, tb) < 2:
        tb = max(8, _round_up(pl.cdiv(B, 2), 8))
    grid = (pl.cdiv(B, tb),)

    # Weights & biases: constant block index -> fetched once, VMEM-resident for all tiles.
    def resident(r, c):
        return pl.BlockSpec((r, c), lambda i: (0, 0))

    flops = 2 * B * (n_obs * HIDDEN + HIDDEN * HIDDEN + HIDDEN * n3)
    bytes_accessed = (x.size * x.dtype.itemsize
                      + sum(int(v.size) * v.dtype.itemsize for v in prepped.values())
                      + B * n3 * 4)

    q_padded = pl.pallas_call(
        functools.partial(dqn_kernel, n_obs=n_obs, compute_dtype=compute_dtype),
        out_shape=jax.ShapeDtypeStruct((B, n3), jnp.float32),
        grid=grid,
        in_specs=[
            pl.BlockSpec((tb, n_obs), lambda i: (i, 0)),      # x tile, unpadded lane dim
            resident(n_obs, HIDDEN), resident(1, HIDDEN),      # w1, b1 (f32)
            resident(HIDDEN, HIDDEN), resident(1, HIDDEN),     # w2 (bf16), b2 (f32)
            resident(HIDDEN, n3), resident(1, n3),             # w3 (bf16, lane-padded), b3
        ],
        out_specs=pl.BlockSpec((tb, n3), lambda i: (i, 0)),    # lane-dense 128-wide stores
        compiler_params=pltpu.CompilerParams(
            dimension_semantics=("parallel",),                 # shard batch tiles over TCs
            vmem_limit_bytes=32 * 1024 * 1024,
        ),
        cost_estimate=pl.CostEstimate(
            flops=flops, transcendentals=0, bytes_accessed=bytes_accessed),
    )(x, prepped["w1"], prepped["b1"], prepped["w2"], prepped["b2"],
      prepped["w3"], prepped["b3"])

    if n_actions is None:
        return q_padded
    # Tiny lane slice (2 of 128 lanes), fused under jit; padded lanes are exactly 0.
    return q_padded[:, :n_actions]


def init_params(key, n_observations, n_actions, hidden=HIDDEN):
    """PyTorch nn.Linear-style U(-1/sqrt(fan_in), 1/sqrt(fan_in)) init; weights stored as
    (in_features, out_features) = transpose of nn.Linear.weight."""
    ks = jax.random.split(key, 6)

    def linear(kw, kb, fan_in, fan_out):
        bound = 1.0 / jnp.sqrt(jnp.float32(fan_in))
        w = jax.random.uniform(kw, (fan_in, fan_out), jnp.float32, -bound, bound)
        b = jax.random.uniform(kb, (1, fan_out), jnp.float32, -bound, bound)
        return w, b

    w1, b1 = linear(ks[0], ks[1], n_observations, hidden)
    w2, b2 = linear(ks[2], ks[3], hidden, hidden)
    w3, b3 = linear(ks[4], ks[5], hidden, n_actions)
    return dict(w1=w1, b1=b1, w2=w2, b2=b2, w3=w3, b3=b3)


def dqn_reference(x, p):
    h1 = jnp.maximum(x @ p["w1"] + p["b1"], 0.0)
    h2 = jnp.maximum(h1 @ p["w2"] + p["b2"], 0.0)
    return h2 @ p["w3"] + p["b3"]


if __name__ == "__main__":
    key = jax.random.PRNGKey(0)
    k_x, k_p, k_x2 = jax.random.split(key, 3)

    n_observations = 4   # e.g. CartPole observation dim
    n_actions = 2        # e.g. CartPole action dim
    params = init_params(k_p, n_observations, n_actions)

    # One-time param prep (padding / bf16 cast happens here, NOT per forward call).
    prepped_f32 = prepare_params(params, compute_dtype=jnp.float32)
    prepped_bf16 = prepare_params(params, compute_dtype=jnp.bfloat16)  # default fast path

    # Small per-step inference batch (1 grid tile) and a replay-sized batch
    # (300 rows -> 2 tiles of 152, exercising the masked edge block and the 2-TC split).
    x_small = jax.random.normal(k_x, (8, n_observations), jnp.float32)
    x_big = jax.random.normal(k_x2, (300, n_observations), jnp.float32)

    for x in (x_small, x_big):
        ref = dqn_reference(x, params)

        # f32 matmul path: tight against the reference semantics (use for TD targets).
        out_f32 = jax.block_until_ready(
            dqn_forward(x, prepped_f32, n_actions=n_actions))
        assert out_f32.shape == (x.shape[0], n_actions)
        assert jnp.allclose(out_f32, ref, atol=1e-5, rtol=1e-5), "f32 mismatch vs reference"

        # bf16 matmul path (default; v5e/v6e/v7x MXU fast path, f32 accumulation).
        out_bf16 = jax.block_until_ready(
            dqn_forward(x, prepped_bf16, n_actions=n_actions))
        assert out_bf16.shape == (x.shape[0], n_actions)
        assert jnp.allclose(out_bf16, ref, atol=5e-2, rtol=5e-2), "bf16 mismatch vs reference"

        # Lane-padded slab for fused consumers (padded action lanes are exactly 0).
        # TODO(synk): for pure action selection, fuse an in-kernel argmax so only an
        # int32 action column ever leaves VMEM.
        qp = jax.block_until_ready(dqn_forward(x, prepped_bf16))
        assert qp.shape == (x.shape[0], LANE)
        assert jnp.allclose(qp[:, :n_actions], out_bf16, atol=0, rtol=0)

    print("KERNEL_OK")
</pallas_src>

<mosaic_0001>
module attributes {stable_mosaic.version = 11 : i64} {
  func.func @dqn_kernel(%arg0: i32, %arg1: memref<8x4xf32, #tpu.memory_space<vmem>>, %arg2: memref<4x128xf32, #tpu.memory_space<vmem>>, %arg3: memref<1x128xf32, #tpu.memory_space<vmem>>, %arg4: memref<128x128xf32, #tpu.memory_space<vmem>>, %arg5: memref<1x128xf32, #tpu.memory_space<vmem>>, %arg6: memref<128x128xf32, #tpu.memory_space<vmem>>, %arg7: memref<1x128xf32, #tpu.memory_space<vmem>>, %arg8: memref<8x128xf32, #tpu.memory_space<vmem>>) attributes {dimension_semantics = [#tpu.dimension_semantics<parallel>], iteration_bounds = array<i64: 1>, scalar_prefetch = 0 : i64, scratch_operands = 0 : i64, tpu.core_type = #tpu.core_type<tc>, window_params = [{transform_indices = @transform_0, window_bounds = array<i64: 8, 4>}, {pipeline_mode = #tpu.pipeline_mode<synchronous>, transform_indices = @transform_1, window_bounds = array<i64: 4, 128>}, {pipeline_mode = #tpu.pipeline_mode<synchronous>, transform_indices = @transform_2, window_bounds = array<i64: 1, 128>}, {pipeline_mode = #tpu.pipeline_mode<synchronous>, transform_indices = @transform_3, window_bounds = array<i64: 128, 128>}, {pipeline_mode = #tpu.pipeline_mode<synchronous>, transform_indices = @transform_4, window_bounds = array<i64: 1, 128>}, {pipeline_mode = #tpu.pipeline_mode<synchronous>, transform_indices = @transform_5, window_bounds = array<i64: 128, 128>}, {pipeline_mode = #tpu.pipeline_mode<synchronous>, transform_indices = @transform_6, window_bounds = array<i64: 1, 128>}, {transform_indices = @transform_7, window_bounds = array<i64: 8, 128>}]} {
    %c0 = arith.constant 0 : index
    %c0_0 = arith.constant 0 : index
    %0 = vector.load %arg1[%c0, %c0_0] : memref<8x4xf32, #tpu.memory_space<vmem>>, vector<8x1xf32>
    %c0_1 = arith.constant 0 : index
    %c0_2 = arith.constant 0 : index
    %1 = vector.load %arg2[%c0_1, %c0_2] : memref<4x128xf32, #tpu.memory_space<vmem>>, vector<1x128xf32>
    %2 = vector.broadcast %0 : vector<8x1xf32> to vector<8x128xf32>
    %3 = vector.broadcast %1 : vector<1x128xf32> to vector<8x128xf32>
    %4 = arith.mulf %2, %3 : vector<8x128xf32>
    %c0_3 = arith.constant 0 : index
    %c1 = arith.constant 1 : index
    %5 = vector.load %arg1[%c0_3, %c1] : memref<8x4xf32, #tpu.memory_space<vmem>>, vector<8x1xf32>
    %c1_4 = arith.constant 1 : index
    %c0_5 = arith.constant 0 : index
    %6 = vector.load %arg2[%c1_4, %c0_5] : memref<4x128xf32, #tpu.memory_space<vmem>>, vector<1x128xf32>
    %7 = vector.broadcast %5 : vector<8x1xf32> to vector<8x128xf32>
    %8 = vector.broadcast %6 : vector<1x128xf32> to vector<8x128xf32>
    %9 = arith.mulf %7, %8 : vector<8x128xf32>
    %10 = arith.addf %4, %9 : vector<8x128xf32>
    %c0_6 = arith.constant 0 : index
    %c2 = arith.constant 2 : index
    %11 = vector.load %arg1[%c0_6, %c2] : memref<8x4xf32, #tpu.memory_space<vmem>>, vector<8x1xf32>
    %c2_7 = arith.constant 2 : index
    %c0_8 = arith.constant 0 : index
    %12 = vector.load %arg2[%c2_7, %c0_8] : memref<4x128xf32, #tpu.memory_space<vmem>>, vector<1x128xf32>
    %13 = vector.broadcast %11 : vector<8x1xf32> to vector<8x128xf32>
    %14 = vector.broadcast %12 : vector<1x128xf32> to vector<8x128xf32>
    %15 = arith.mulf %13, %14 : vector<8x128xf32>
    %16 = arith.addf %10, %15 : vector<8x128xf32>
    %c0_9 = arith.constant 0 : index
    %c3 = arith.constant 3 : index
    %17 = vector.load %arg1[%c0_9, %c3] : memref<8x4xf32, #tpu.memory_space<vmem>>, vector<8x1xf32>
    %c3_10 = arith.constant 3 : index
    %c0_11 = arith.constant 0 : index
    %18 = vector.load %arg2[%c3_10, %c0_11] : memref<4x128xf32, #tpu.memory_space<vmem>>, vector<1x128xf32>
    %19 = vector.broadcast %17 : vector<8x1xf32> to vector<8x128xf32>
    %20 = vector.broadcast %18 : vector<1x128xf32> to vector<8x128xf32>
    %21 = arith.mulf %19, %20 : vector<8x128xf32>
    %22 = arith.addf %16, %21 : vector<8x128xf32>
    %c0_12 = arith.constant 0 : index
    %c0_13 = arith.constant 0 : index
    %23 = vector.load %arg3[%c0_12, %c0_13] : memref<1x128xf32, #tpu.memory_space<vmem>>, vector<1x128xf32>
    %24 = vector.broadcast %23 : vector<1x128xf32> to vector<8x128xf32>
    %25 = arith.addf %22, %24 : vector<8x128xf32>
    %cst = arith.constant 0.000000e+00 : f32
    %26 = vector.broadcast %cst : f32 to vector<8x128xf32>
    %27 = arith.maximumf %25, %26 : vector<8x128xf32>
    %c0_14 = arith.constant 0 : index
    %c0_15 = arith.constant 0 : index
    %28 = vector.load %arg4[%c0_14, %c0_15] : memref<128x128xf32, #tpu.memory_space<vmem>>, vector<128x128xf32>
    %cst_16 = arith.constant dense<0.000000e+00> : vector<8x128xf32>
    %29 = tpu.matmul %27, %28, %cst_16 {dimension_numbers = #tpu.dot_dimension_numbers<[1], [0], [0], [1], [0, 0, 1, 1], [], []>} : vector<8x128xf32>, vector<128x128xf32>, vector<8x128xf32> -> vector<8x128xf32>
    %c0_17 = arith.constant 0 : index
    %c0_18 = arith.constant 0 : index
    %30 = vector.load %arg5[%c0_17, %c0_18] : memref<1x128xf32, #tpu.memory_space<vmem>>, vector<1x128xf32>
    %31 = vector.broadcast %30 : vector<1x128xf32> to vector<8x128xf32>
    %32 = arith.addf %29, %31 : vector<8x128xf32>
    %cst_19 = arith.constant 0.000000e+00 : f32
    %33 = vector.broadcast %cst_19 : f32 to vector<8x128xf32>
    %34 = arith.maximumf %32, %33 : vector<8x128xf32>
    %c0_20 = arith.constant 0 : index
    %c0_21 = arith.constant 0 : index
    %35 = vector.load %arg6[%c0_20, %c0_21] : memref<128x128xf32, #tpu.memory_space<vmem>>, vector<128x128xf32>
    %cst_22 = arith.constant dense<0.000000e+00> : vector<8x128xf32>
    %36 = tpu.matmul %34, %35, %cst_22 {dimension_numbers = #tpu.dot_dimension_numbers<[1], [0], [0], [1], [0, 0, 1, 1], [], []>} : vector<8x128xf32>, vector<128x128xf32>, vector<8x128xf32> -> vector<8x128xf32>
    %c0_23 = arith.constant 0 : index
    %c0_24 = arith.constant 0 : index
    %37 = vector.load %arg7[%c0_23, %c0_24] : memref<1x128xf32, #tpu.memory_space<vmem>>, vector<1x128xf32>
    %38 = vector.broadcast %37 : vector<1x128xf32> to vector<8x128xf32>
    %39 = arith.addf %36, %38 : vector<8x128xf32>
    %c0_25 = arith.constant 0 : index
    %c0_26 = arith.constant 0 : index
    %40 = vector.load %arg8[%c0_25, %c0_26] : memref<8x128xf32, #tpu.memory_space<vmem>>, vector<8x128xf32>
    tpu.vector_store %arg8[%c0_25, %c0_26], %39 {strides = array<i32>} : memref<8x128xf32, #tpu.memory_space<vmem>>, vector<8x128xf32>,
    return
  }
  func.func @transform_0(%arg0: i32) -> (i32, i32) {
    %c0_i32 = arith.constant 0 : i32
    %c0_i32_0 = arith.constant 0 : i32
    return %arg0, %c0_i32 : i32, i32
  }
  func.func @transform_1(%arg0: i32) -> (i32, i32) {
    %c0_i32 = arith.constant 0 : i32
    %c0_i32_0 = arith.constant 0 : i32
    %c0_i32_1 = arith.constant 0 : i32
    return %c0_i32, %c0_i32_0 : i32, i32
  }
  func.func @transform_2(%arg0: i32) -> (i32, i32) {
    %c0_i32 = arith.constant 0 : i32
    %c0_i32_0 = arith.constant 0 : i32
    %c0_i32_1 = arith.constant 0 : i32
    return %c0_i32, %c0_i32_0 : i32, i32
  }
  func.func @transform_3(%arg0: i32) -> (i32, i32) {
    %c0_i32 = arith.constant 0 : i32
    %c0_i32_0 = arith.constant 0 : i32
    %c0_i32_1 = arith.constant 0 : i32
    return %c0_i32, %c0_i32_0 : i32, i32
  }
  func.func @transform_4(%arg0: i32) -> (i32, i32) {
    %c0_i32 = arith.constant 0 : i32
    %c0_i32_0 = arith.constant 0 : i32
    %c0_i32_1 = arith.constant 0 : i32
    return %c0_i32, %c0_i32_0 : i32, i32
  }
  func.func @transform_5(%arg0: i32) -> (i32, i32) {
    %c0_i32 = arith.constant 0 : i32
    %c0_i32_0 = arith.constant 0 : i32
    %c0_i32_1 = arith.constant 0 : i32
    return %c0_i32, %c0_i32_0 : i32, i32
  }
  func.func @transform_6(%arg0: i32) -> (i32, i32) {
    %c0_i32 = arith.constant 0 : i32
    %c0_i32_0 = arith.constant 0 : i32
    %c0_i32_1 = arith.constant 0 : i32
    return %c0_i32, %c0_i32_0 : i32, i32
  }
  func.func @transform_7(%arg0: i32) -> (i32, i32) {
    %c0_i32 = arith.constant 0 : i32
    %c0_i32_0 = arith.constant 0 : i32
    return %arg0, %c0_i32 : i32, i32
  }
}

</mosaic_0001>

<bundles_post_ra>
// kernel: dqn_forward.1
= control target key start
LH: loop header
LB: loop body
LE: loop exit
PB: predicated region body
PF: predicated region fallthrough
CT: control target
= control target key end

     0   :  { %12 = vsyncpa [#allocation3], 0  ;;  %s643_s0 = inlined_call_operand.vmem [shape: f32[8,4], index: 0, kind: input, shape index: {}]   ;;  %s644_s1 = inlined_call_operand.vmem [shape: f32[4,128], index: 1, kind: input, shape index: {}]   ;;  %s645_s2 = inlined_call_operand.vmem [shape: f32[1,128], index: 2, kind: input, shape index: {}]   ;;  %s646_s3 = inlined_call_operand.hbm [shape: f32[128,128], index: 3, kind: input, shape index: {}]   ;;  %s647_s4 = inlined_call_operand.vmem [shape: f32[1,128], index: 4, kind: input, shape index: {}]   ;;  %s648_s5 = inlined_call_operand.hbm [shape: f32[128,128], index: 5, kind: input, shape index: {}]   ;;  %s649_s6 = inlined_call_operand.vmem [shape: f32[1,128], index: 6, kind: input, shape index: {}]   ;;  %s650_s7 = inlined_call_operand.vmem [shape: f32[8,128], index: 7, kind: output, shape index: {}]  }
   0x1   :  { %13 = vsyncpa [#allocation5], 0  ;;  %s525_s24 = smov [#allocation2]   ;;  %s477_s28 = scalar_lea.hbm %s646_s3, 2048 }
   0x2   :  { %s25_s25 = sshll.u32 %s525_s24, 4  ;;  %p478_p0 = scmp.ne.s32.totalorder %s646_s3, %s477_s28  ;;  %s26_s25 = int_to_ptr.vmem [resolvable:$true] %s25_s25 }
   0x3   :  { %p481_p1 = scmp.lt.u32.totalorder %s477_s28, %s646_s3 }
   0x5   :  { %p483_p2 = pnand %p481_p1, %p478_p0 }
   0x7   :  { %486 = shalt.err (!%p483_p2)
}
   0x8   :  { %s487_s10 = scalar_lea.vmem %s26_s25, 2048  ;;  %p492_p4 = scmp.lt.s32.totalorder %s26_s25, %s26_s25 }
   0x9   :  { %p488_p3 = scmp.ne.s32.totalorder %s26_s25, %s487_s10  ;;  %p493_p5 = scmp.lt.s32.totalorder %s487_s10, %s487_s10 }
   0xb   :  { %p494_p6 = por %p493_p5, %p492_p4 }
   0xd   :  { %p495_p7 = pnand %p494_p6, %p488_p3 }
   0xf   :  { %498 = shalt.err (!%p495_p7)
}
  0x10   :  { %s526_s11 = smov 128   ;;  %s527_s12 = smov 8  }
  0x11   :  { %31 = dma.hbm_to_vmem [thread:$0]  %s646_s3, 2048, %s26_s25, [#allocation3], %s526_s11, %s526_s11, %s527_s12  }
  0x12   :  { %s528_s15 = smov [#allocation4]   ;;  %s499_s19 = scalar_lea.hbm %s648_s5, 2048 }
  0x13   :  { %s39_s16 = sshll.u32 %s528_s15, 4  ;;  %p500_p8 = scmp.ne.s32.totalorder %s648_s5, %s499_s19  ;;  %s40_s16 = int_to_ptr.vmem [resolvable:$true] %s39_s16 }
  0x14   :  { %p503_p9 = scmp.lt.u32.totalorder %s499_s19, %s648_s5 }
  0x16   :  { %p505_p10 = pnand %p503_p9, %p500_p8 }
  0x18   :  { %508 = shalt.err (!%p505_p10)
}
  0x19   :  { %s509_s24 = scalar_lea.vmem %s40_s16, 2048  ;;  %p514_p12 = scmp.lt.s32.totalorder %s40_s16, %s40_s16 }
  0x1a   :  { %p510_p11 = scmp.ne.s32.totalorder %s40_s16, %s509_s24  ;;  %p515_p13 = scmp.lt.s32.totalorder %s509_s24, %s509_s24 }
  0x1c   :  { %p516_p0 = por %p515_p13, %p514_p12 }
  0x1e   :  { %p517_p1 = pnand %p516_p0, %p510_p11 }
  0x20   :  { %520 = shalt.err (!%p517_p1)
}
  0x21   :  { %45 = dma.hbm_to_vmem [thread:$0]  %s648_s5, 2048, %s40_s16, [#allocation5], %s526_s11, %s526_s11, %s527_s12  }
  0x22   :  { %521 = dma.done.wait [#allocation3], 2048  }
  0x23   :  { %522 = vsyncadd [#allocation3], 4294965248 }
  0x24   :  { %523 = dma.done.wait [#allocation5], 2048  }
  0x25   :  { %524 = vsyncadd [#allocation5], 4294965248  ;;  %v529_v0 = vmov 0   ;;  %v530_v1 = vmov 2   ;;  %v531_v2 = vmov 0.0|0.0   ;;  %v54_v3 = vld [vmem:[%s643_s0] sm:$0xff] }
  0x26   :  { %472 = vset.pattern.permute.xlu0 %v529_v0  ;;  %474 = vset.pattern.permute.xlu1 %v530_v1  ;;  %v108_v4 = vld [vmem:[#allocation2] sm:$0xff]  ;;  %v109_v5 = vld [vmem:[#allocation2 + $0x8] sm:$0xff]  ;;  %v110_v7 = vld [vmem:[#allocation2 + $0x10] sm:$0xff]  ;;  %v532_v12 = vmov 1   ;;  %v533_v13 = vmov 3   ;;  %vm534_vm0 = vmmov 0  }
  0x27   :  { %413 = vmatprep.subr.bf16.mxu0 %v531_v2  ;;  %437 = vmatprep.subr.bf16.mxu1 %v531_v2  ;;  %v414_v6 = vpack.c.bf16 %v109_v5, %v108_v4  ;;  %v111_v8 = vld [vmem:[#allocation2 + $0x18] sm:$0xff]  ;;  %v112_v10 = vld [vmem:[#allocation2 + $0x20] sm:$0xff]  ;;  %v113_v11 = vld [vmem:[#allocation2 + $0x28] sm:$0xff]  ;;  %v535_v20 = vmov 0.0  }
  0x28   :  { %58 = vperm.xlu0 %472, %v54_v3   ;;  %79 = vperm.xlu1 %474, %v54_v3   ;;  %v417_v9 = vpack.c.bf16 %v111_v8, %v110_v7  ;;  %v420_v14 = vpack.c.bf16 %v113_v11, %v112_v10  ;;  %v114_v15 = vld [vmem:[#allocation2 + $0x30] sm:$0xff]  ;;  %v115_v16 = vld [vmem:[#allocation2 + $0x38] sm:$0xff]  ;;  %v116_v18 = vld [vmem:[#allocation2 + $0x40] sm:$0xff] }
  0x29   :  { %415 = vmatpush3.bf16.msra.mxu0 %v414_v6  ;;  %v423_v17 = vpack.c.bf16 %v115_v16, %v114_v15  ;;  %v117_v19 = vld [vmem:[#allocation2 + $0x48] sm:$0xff]  ;;  %375 = vmatprep.mubr.msk.f32.mxu0 %vm534_vm0, %v535_v20  ;;  %v118_v22 = vld [vmem:[#allocation2 + $0x50] sm:$0xff]  ;;  %v119_v23 = vld [vmem:[#allocation2 + $0x58] sm:$0xff] }
  0x2a   :  { %416 = vmatprep.subr.bf16.mxu0 %v531_v2  ;;  %410 = vmatprep.mubr.msk.f32.mxu1 %vm534_vm0, %v535_v20  ;;  %v426_v21 = vpack.c.bf16 %v117_v19, %v116_v18  ;;  %v202_v24 = vld [vmem:[#allocation4] sm:$0xff]  ;;  %v203_v25 = vld [vmem:[#allocation4 + $0x8] sm:$0xff]  ;;  %v204_v26 = vld [vmem:[#allocation4 + $0x10] sm:$0xff]  ;;  %v429_v27 = vpack.c.bf16 %v119_v23, %v118_v22 }
  0x2b   :  { %v438_v28 = vpack.c.bf16 %v203_v25, %v202_v24  ;;  %v205_v29 = vld [vmem:[#allocation4 + $0x18] sm:$0xff]  ;;  %v120_v30 = vld [vmem:[#allocation2 + $0x60] sm:$0xff]  ;;  %v121_v31 = vld [vmem:[#allocation2 + $0x68] sm:$0xff] }
  0x2c   :  { %473 = vset.pattern.permute.xlu0 %v532_v12  ;;  %475 = vset.pattern.permute.xlu1 %v533_v13  ;;  %v441_v32 = vpack.c.bf16 %v205_v29, %v204_v26  ;;  %v206_v33 = vld [vmem:[#allocation4 + $0x20] sm:$0xff]  ;;  %v207_v34 = vld [vmem:[#allocation4 + $0x28] sm:$0xff]  ;;  %v432_v35 = vpack.c.bf16 %v121_v31, %v120_v30  ;;  %v122_v36 = vld [vmem:[#allocation2 + $0x70] sm:$0xff] }
  0x2d   :  { %68 = vperm.xlu0 %473, %v54_v3   ;;  %90 = vperm.xlu1 %475, %v54_v3   ;;  %v123_v37 = vld [vmem:[#allocation2 + $0x78] sm:$0xff]  ;;  %v444_v38 = vpack.c.bf16 %v207_v34, %v206_v33  ;;  %v208_v39 = vld [vmem:[#allocation4 + $0x30] sm:$0xff]  ;;  %v210_v43 = vld [vmem:[#allocation4 + $0x40] sm:$0xff] }
  0x2e   :  { %418 = vmatpush3.bf16.msra.mxu0 %v417_v9  ;;  %439 = vmatpush3.bf16.msra.mxu1 %v438_v28  ;;  %v209_v40 = vld [vmem:[#allocation4 + $0x38] sm:$0xff]  ;;  %v435_v41 = vpack.c.bf16 %v123_v37, %v122_v36  ;;  %v211_v44 = vld [vmem:[#allocation4 + $0x48] sm:$0xff]  ;;  %v212_v46 = vld [vmem:[#allocation4 + $0x50] sm:$0xff] }
  0x2f   :  { %419 = vmatprep.subr.bf16.mxu0 %v531_v2  ;;  %440 = vmatprep.subr.bf16.mxu1 %v531_v2  ;;  %v447_v42 = vpack.c.bf16 %v209_v40, %v208_v39  ;;  %v450_v45 = vpack.c.bf16 %v211_v44, %v210_v43  ;;  %v213_v47 = vld [vmem:[#allocation4 + $0x58] sm:$0xff]  ;;  %v214_v49 = vld [vmem:[#allocation4 + $0x60] sm:$0xff]  ;;  %v215_v50 = vld [vmem:[#allocation4 + $0x68] sm:$0xff] }
  0x30   :  { %v453_v48 = vpack.c.bf16 %v213_v47, %v212_v46  ;;  %v456_v51 = vpack.c.bf16 %v215_v50, %v214_v49  ;;  %v302_v54 = vld [vmem:[%s644_s1] ss:$0 sm:$0xff]  ;;  %v303_v55 = vld [vmem:[%s644_s1 + $0x1] ss:$0 sm:$0xff]  ;;  %v304_v56 = vld [vmem:[%s644_s1 + $0x2] ss:$0 sm:$0xff] }
  0x31   :  { %476 = vset.pattern.permute.xlu0 %v533_v13  ;;  %v305_v58 = vld [vmem:[%s644_s1 + $0x3] ss:$0 sm:$0xff]  ;;  %v216_v6 = vld [vmem:[#allocation4 + $0x70] sm:$0xff]  ;;  %v217_v7 = vld [vmem:[#allocation4 + $0x78] sm:$0xff] }
  0x32   :  { %421 = vmatpush3.bf16.msra.mxu0 %v420_v14  ;;  %442 = vmatpush3.bf16.msra.mxu1 %v441_v32  ;;  %v459_v8 = vpack.c.bf16 %v217_v7, %v216_v6  ;;  %v307_v9 = vld [vmem:[%s647_s4] ss:$0 sm:$0xff] }
  0x33   :  { %422 = vmatprep.subr.bf16.mxu0 %v531_v2  ;;  %443 = vmatprep.subr.bf16.mxu1 %v531_v2  ;;  %v308_v14 = vld [vmem:[%s649_s6] ss:$0 sm:$0xff] }
  0x36   :  { %424 = vmatpush3.bf16.msra.mxu0 %v423_v17  ;;  %445 = vmatpush3.bf16.msra.mxu1 %v444_v38 }
  0x37   :  { %425 = vmatprep.subr.bf16.mxu0 %v531_v2  ;;  %446 = vmatprep.subr.bf16.mxu1 %v531_v2 }
  0x3a   :  { %427 = vmatpush3.bf16.msra.mxu0 %v426_v21  ;;  %448 = vmatpush3.bf16.msra.mxu1 %v447_v42 }
  0x3b   :  { %428 = vmatprep.subr.bf16.mxu0 %v531_v2  ;;  %449 = vmatprep.subr.bf16.mxu1 %v531_v2 }
  0x3e   :  { %430 = vmatpush3.bf16.msra.mxu0 %v429_v27  ;;  %451 = vmatpush3.bf16.msra.mxu1 %v450_v45 }
  0x3f   :  { %431 = vmatprep.subr.bf16.mxu0 %v531_v2  ;;  %452 = vmatprep.subr.bf16.mxu1 %v531_v2 }
  0x42   :  { %433 = vmatpush3.bf16.msra.mxu0 %v432_v35  ;;  %454 = vmatpush3.bf16.msra.mxu1 %v453_v48 }
  0x43   :  { %434 = vmatprep.subr.bf16.mxu0 %v531_v2  ;;  %455 = vmatprep.subr.bf16.mxu1 %v531_v2 }
  0x46   :  { %436 = vmatpush3.bf16.msra.mxu0 %v435_v41  ;;  %457 = vmatpush3.bf16.msra.mxu1 %v456_v51 }
  0x47   :  { %458 = vmatprep.subr.bf16.mxu1 %v531_v2  ;;  %v306_v2 = vld [vmem:[%s645_s2] ss:$0 sm:$0xff] }
  0x4a   :  { %460 = vmatpush3.bf16.msra.mxu1 %v459_v8 }
  0xa7   :  { %v59_v52 = vpop.permute.xlu0 %58  ;;  %v80_v53 = vpop.permute.xlu1 %79 }
  0xa8   :  { %v65_v60 = vmul.f32 %v302_v54, %v59_v52  ;;  %v86_v62 = vmul.f32 %v304_v56, %v80_v53 }
  0xac   :  { %v69_v57 = vpop.permute.xlu0 %68  ;;  %v91_v59 = vpop.permute.xlu1 %90 }
  0xad   :  { %v75_v61 = vmul.f32 %v303_v55, %v69_v57  ;;  %v97_v0 = vmul.f32 %v305_v58, %v91_v59 }
  0xaf   :  { %v76_v63 = vadd.f32 %v75_v61, %v65_v60 }
  0xb1   :  { %v87_v1 = vadd.f32 %v86_v62, %v76_v63 }
  0xb3   :  { %v98_v3 = vadd.f32 %v97_v0, %v87_v1 }
  0xb5   :  { %v106_v4 = vadd.f32 %v306_v2, %v98_v3 }
  0xb7   :  { %v107_v5 = vmax.f32 %v106_v4, 0.0 }
  0xb9   :  { %376 = vmatmul.mubr.f32.vlgmr.msra.gmra.mrb[0].mxu0 %v107_v5 }
 0x18c   :  { %v197_v10 = vpop.f32.mrb[0].mxu0 }
 0x18d   :  { %v198_v11 = vadd.f32 %v307_v9, %v197_v10  ;;  %v377_v12 = vpop.f32.mrb[1].mxu0 }
 0x18f   :  { %v201_v13 = vmax.f32 %v198_v11, 0.0 }
 0x191   :  { %411 = vmatmul.mubr.f32.vlgmr.msra.gmra.mrb[0].mxu1 %v201_v13 }
 0x264   :  { %v291_v15 = vpop.f32.mrb[0].mxu1 }
 0x265   :  { %v292_v16 = vadd.f32 %v308_v14, %v291_v15  ;;  %v412_v17 = vpop.f32.mrb[1].mxu1 }
 0x267   :  { %295 = vst [vmem:[%s650_s7] sm:$0xff] %v292_v16 }
 0x268   :  { %300 = vsyncpa [#allocation3], 1 }
 0x269   :  { %301 = vsyncpa [#allocation5], 1 }

</bundles_post_ra>
